<compile_context>
chip_gen: v5e
topology: v5e:2x2
jax: 0.10.0
libtpu: 0.0.40
codegen_flags: <defaults>
</compile_context>

<pallas_src>
import functools
import math

import jax
import jax.numpy as jnp
from jax.experimental import pallas as pl
from jax.experimental.pallas import tpu as pltpu


# ----------------------------------------------------------------------------- kernels
def _replicate_lanes(v, reps):
    """Replicate v (ts, D) `reps` times along lanes using O(log reps) aligned concats."""
    if reps == 1:
        return v
    half = _replicate_lanes(v, reps // 2)
    out = jnp.concatenate([half, half], axis=-1)
    if reps % 2:
        out = jnp.concatenate([out, v], axis=-1)
    return out


def _pe_add_flat_kernel(x_ref, pe_ref, o_ref, *, reps):
    # x_ref / o_ref: (ts, tb*D) lane-dense; pe_ref: (ts, D).
    pe = pe_ref[...]
    if reps > 1:
        pe = _replicate_lanes(pe, reps)            # on-chip batch replication
    o_ref[...] = x_ref[...].astype(o_ref.dtype) + pe.astype(o_ref.dtype)


def _pe_add_3d_kernel(x_ref, pe_ref, o_ref):
    # x_ref / o_ref: (ts, B, D); pe_ref: (ts, 1, D) broadcast over batch (sublanes).
    o_ref[...] = x_ref[...].astype(o_ref.dtype) + pe_ref[...].astype(o_ref.dtype)


# ----------------------------------------------------------------------------- pe buffer (__init__)
def make_pe_buffer(d_model, max_len=5000, dtype=jnp.float32):
    """Deterministic construction of the `pe` buffer from __init__ (plain JAX glue)."""
    position = jnp.arange(max_len, dtype=jnp.float32)[:, None]              # (max_len, 1)
    div_term = jnp.exp(
        jnp.arange(0, d_model, 2, dtype=jnp.float32) * -(math.log(10000.0) / d_model)
    )                                                                        # (d_model//2,)
    ang = position * div_term                                                # (max_len, d_model//2)
    pe = jnp.zeros((max_len, 1, d_model), dtype=jnp.float32)
    pe = pe.at[:, 0, 0::2].set(jnp.sin(ang))
    pe = pe.at[:, 0, 1::2].set(jnp.cos(ang))
    return pe.astype(dtype)


# ----------------------------------------------------------------------------- helpers
def _vmem_capacity_bytes():
    try:
        return int(pltpu.get_tpu_info().vmem_capacity_bytes)
    except Exception:
        return 64 * 1024 * 1024        # conservative (v7x) fallback


def _row_tile(S, ts_fit):
    """Seq-row tile: sublane-aligned, VMEM-fitting, and small enough that the grid
    has several steps (both v7x TensorCores get work; DMA overlaps compute)."""
    if S <= 8:
        return max(1, S)               # full-extent block (no alignment constraint)
    desired_steps = min(8, max(1, S // 8))
    ts_cap = max(8, (S // desired_steps) // 8 * 8)
    ts = max(8, min(int(ts_fit), 2048, ts_cap))
    return (ts // 8) * 8


# ----------------------------------------------------------------------------- forward
def positional_encoding(x, pe, *, dropout_p=0.1, training=False):
    """x: (S, B, D); pe: (max_len, 1, D).  Returns x + pe[:S] (eval-mode dropout = identity).

    When out.dtype == x.dtype, x's HBM buffer is aliased to the output: donate x at the
    call site to avoid a defensive copy, and do not read x after this call.
    """
    S, B, D = x.shape
    max_len = pe.shape[0]
    assert pe.shape == (max_len, 1, D), "pe must have shape (max_len, 1, d_model)"
    assert S <= max_len, f"sequence length {S} exceeds pe max_len {max_len}"

    out_dtype = jnp.promote_types(x.dtype, pe.dtype)   # PyTorch promotion semantics
    xi = jnp.dtype(x.dtype).itemsize
    oi = jnp.dtype(out_dtype).itemsize
    pi = jnp.dtype(pe.dtype).itemsize

    vmem_cap = _vmem_capacity_bytes()                  # 64 MiB (v7x) / 128 MiB (v5e, v6e)
    vmem_limit = min(vmem_cap // 2, 96 * 1024 * 1024)
    budget = (vmem_limit * 3) // 4                     # headroom under the scoped limit

    if D % 128 == 0:
        # ---- lane-dense flattened path: x viewed as (S, B*D) ------------------------
        x_in = x.reshape(S, B * D)                     # metadata-only reshape
        pe_in = pe.reshape(max_len, D)                 # drop the unit batch dim

        def ts_fit(tb):
            # double-buffered x + out blocks, pe block, plus the replicated-pe temp
            row = tb * D * (xi + 2 * oi) + D * pi
            return budget // (2 * row)

        tb = B
        if ts_fit(tb) < 8 and B > 1:
            # fat rows: split the batch-column axis instead of blowing the VMEM limit
            denom = 16 * D * (xi + 2 * oi)
            tb = max(1, min(B, int((budget - 16 * D * pi) // max(denom, 1))))
        ts = _row_tile(S, ts_fit(tb))
        if S < 8:
            pe_in = pe_in[:S]                          # tiny copy; makes ts == full dim legal

        block_bytes = ts * (tb * D * (xi + 2 * oi) + D * pi)
        grid = (pl.cdiv(S, ts), pl.cdiv(B, tb))
        kernel = functools.partial(_pe_add_flat_kernel, reps=tb)
        in_specs = [pl.BlockSpec((ts, tb * D), lambda i, j: (i, j)),
                    pl.BlockSpec((ts, D), lambda i, j: (i, 0))]
        out_spec = pl.BlockSpec((ts, tb * D), lambda i, j: (i, j))
        out_struct = jax.ShapeDtypeStruct((S, B * D), out_dtype)
        dim_sems = ("parallel", "parallel")
    else:
        # ---- small / unaligned d_model: 3-D blocks, sublane broadcast of pe ---------
        x_in = x
        pe_in = pe                                     # (max_len, 1, D), no slice / cast
        pad_sub = ((B + 7) // 8) * 8
        pad_lane = ((D + 127) // 128) * 128
        row = pad_sub * pad_lane * (xi + oi) + 8 * pad_lane * pi   # padded VMEM bytes/row
        ts = _row_tile(S, budget // (2 * row))
        block_bytes = ts * row

        grid = (pl.cdiv(S, ts),)
        kernel = _pe_add_3d_kernel
        in_specs = [pl.BlockSpec((ts, B, D), lambda i: (i, 0, 0)),
                    pl.BlockSpec((ts, 1, D), lambda i: (i, 0, 0))]
        out_spec = pl.BlockSpec((ts, B, D), lambda i: (i, 0, 0))
        out_struct = jax.ShapeDtypeStruct((S, B, D), out_dtype)
        dim_sems = ("parallel",)
        # TODO(synk): for huge B*D with D % 128 != 0, also tile the batch axis.

    # double-buffered working set + slack, clamped to physical VMEM
    vmem_limit = int(min(vmem_cap, max(vmem_limit, 2 * block_bytes + (2 << 20))))

    aliases = {0: 0} if out_dtype == x.dtype else {}

    out = pl.pallas_call(
        kernel,
        out_shape=out_struct,
        grid=grid,
        in_specs=in_specs,
        out_specs=out_spec,
        input_output_aliases=aliases,
        compiler_params=pltpu.CompilerParams(
            dimension_semantics=dim_sems,
            vmem_limit_bytes=vmem_limit,
        ),
    )(x_in, pe_in)

    # nn.Dropout is identity in eval mode; reproduced here.
    # TODO(synk): training-mode dropout (p=dropout_p) should be fused into this kernel
    # via pltpu.prng_seed + pltpu.prng_random_bits instead of a second HBM pass.
    return out.reshape(S, B, D)


# ----------------------------------------------------------------------------- tests
if __name__ == "__main__":
    key = jax.random.PRNGKey(0)
    max_len = 5000
    k1, k2, k3 = jax.random.split(key, 3)

    # Case 1: small d_model (< 128) -> 3-D blocks, in-kernel sublane broadcast of pe.
    d_model, seq_len, batch = 32, 8, 2
    x = jax.random.normal(k1, (seq_len, batch, d_model), dtype=jnp.float32)
    pe = make_pe_buffer(d_model, max_len=max_len)
    ref = x + pe[:seq_len]                      # reference computed before the aliased call
    out = jax.block_until_ready(positional_encoding(x, pe))
    assert out.shape == (seq_len, batch, d_model) and out.dtype == jnp.float32
    assert jnp.allclose(out, ref, atol=1e-6, rtol=1e-6)

    # Case 2: d_model % 128 == 0 -> lane-dense flattened path, in-kernel pe replication.
    d_model2, seq_len2, batch2 = 128, 16, 2
    x2 = jax.random.normal(k2, (seq_len2, batch2, d_model2), dtype=jnp.float32)
    pe2 = make_pe_buffer(d_model2, max_len=max_len)
    ref2 = x2 + pe2[:seq_len2]
    out2 = jax.block_until_ready(positional_encoding(x2, pe2))
    assert out2.shape == (seq_len2, batch2, d_model2)
    assert jnp.allclose(out2, ref2, atol=1e-6, rtol=1e-6)

    # Case 3: bf16 activations + f32 pe buffer -> f32 output (PyTorch promotion semantics).
    x3 = jax.random.normal(k3, (seq_len2, batch2, d_model2), dtype=jnp.bfloat16)
    ref3 = x3 + pe2[:seq_len2]
    out3 = jax.block_until_ready(positional_encoding(x3, pe2))
    assert out3.dtype == jnp.float32
    assert jnp.allclose(out3, ref3, atol=1e-6, rtol=1e-6)

    print("KERNEL_OK")
</pallas_src>

<mosaic_0001>
module attributes {stable_mosaic.version = 11 : i64} {
  func.func @_pe_add_3d_kernel(%arg0: i32, %arg1: memref<8x2x32xf32, #tpu.memory_space<vmem>>, %arg2: memref<8x1x32xf32, #tpu.memory_space<vmem>>, %arg3: memref<8x2x32xf32, #tpu.memory_space<vmem>>) attributes {dimension_semantics = [#tpu.dimension_semantics<parallel>], iteration_bounds = array<i64: 1>, scalar_prefetch = 0 : i64, scratch_operands = 0 : i64, tpu.core_type = #tpu.core_type<tc>, window_params = [{transform_indices = @transform_0, window_bounds = array<i64: 8, 2, 32>}, {transform_indices = @transform_1, window_bounds = array<i64: 8, 1, 32>}, {transform_indices = @transform_2, window_bounds = array<i64: 8, 2, 32>}]} {
    %c0 = arith.constant 0 : index
    %c0_0 = arith.constant 0 : index
    %c0_1 = arith.constant 0 : index
    %0 = vector.load %arg1[%c0, %c0_0, %c0_1] : memref<8x2x32xf32, #tpu.memory_space<vmem>>, vector<8x2x32xf32>
    %c0_2 = arith.constant 0 : index
    %c0_3 = arith.constant 0 : index
    %c0_4 = arith.constant 0 : index
    %1 = vector.load %arg2[%c0_2, %c0_3, %c0_4] : memref<8x1x32xf32, #tpu.memory_space<vmem>>, vector<8x1x32xf32>
    %2 = vector.broadcast %1 : vector<8x1x32xf32> to vector<8x2x32xf32>
    %3 = arith.addf %0, %2 : vector<8x2x32xf32>
    %c0_5 = arith.constant 0 : index
    %c0_6 = arith.constant 0 : index
    %c0_7 = arith.constant 0 : index
    %4 = vector.load %arg3[%c0_5, %c0_6, %c0_7] : memref<8x2x32xf32, #tpu.memory_space<vmem>>, vector<8x2x32xf32>
    tpu.vector_store %arg3[%c0_5, %c0_6, %c0_7], %3 {strides = array<i32>} : memref<8x2x32xf32, #tpu.memory_space<vmem>>, vector<8x2x32xf32>,
    return
  }
  func.func @transform_0(%arg0: i32) -> (i32, i32, i32) {
    %c0_i32 = arith.constant 0 : i32
    %c0_i32_0 = arith.constant 0 : i32
    %c0_i32_1 = arith.constant 0 : i32
    return %arg0, %c0_i32, %c0_i32_0 : i32, i32, i32
  }
  func.func @transform_1(%arg0: i32) -> (i32, i32, i32) {
    %c0_i32 = arith.constant 0 : i32
    %c0_i32_0 = arith.constant 0 : i32
    %c0_i32_1 = arith.constant 0 : i32
    return %arg0, %c0_i32, %c0_i32_0 : i32, i32, i32
  }
  func.func @transform_2(%arg0: i32) -> (i32, i32, i32) {
    %c0_i32 = arith.constant 0 : i32
    %c0_i32_0 = arith.constant 0 : i32
    %c0_i32_1 = arith.constant 0 : i32
    return %arg0, %c0_i32, %c0_i32_0 : i32, i32, i32
  }
}

</mosaic_0001>

<bundles_post_ra>
// kernel: tpu_custom_call.1
= control target key start
LH: loop header
LB: loop body
LE: loop exit
PB: predicated region body
PF: predicated region fallthrough
CT: control target
= control target key end

     0   :  { %7 = vsyncpa [#allocation3], 0  ;;  %s238_s0 = inlined_call_operand.hbm [shape: f32[8,2,32], index: 0, kind: input, shape index: {}, may-alias: {0,2}]   ;;  %s239_s1 = inlined_call_operand.vmem [shape: f32[5000,1,32], index: 1, kind: input, shape index: {}]   ;;  %s240_s2 = inlined_call_operand.hbm [shape: f32[8,2,32], index: 2, kind: output, shape index: {}, may-alias: {0,2}]  }
   0x1   :  { %8 = vsyncpa [#allocation4], 0  ;;  %s13_s11 = sshll.u32 %s238_s0, 4  ;;  %s168_s12 = smov [#allocation2]   ;;  %s14_s11 = int_to_ptr.hbm [resolvable:$true] %s13_s11 }
   0x2   :  { %s15_s13 = sshll.u32 %s168_s12, 4  ;;  %s169_s14 = smov 32   ;;  %s16_s13 = int_to_ptr.vmem [resolvable:$true] %s15_s13 }
   0x3   :  { %s170_s15 = smov 2  }
   0x4   :  { %21 = dma.hbm_to_vmem [thread:$0]  %s14_s11, 256, %s16_s13, [#allocation3], %s169_s14, %s169_s14, %s170_s15  }
   0x5   :  { %164 = dma.done.wait [#allocation3], 256  }
   0x6   :  { %165 = vsyncadd [#allocation3], 4294967040  ;;  %vm76_vm0 = vcmask 254976   ;;  %s171_s16 = smov [#allocation5]   ;;  %s91_s0 = sshll.u32 %s240_s2, 4  ;;  %s92_s0 = int_to_ptr.hbm [resolvable:$true] %s91_s0 }
   0x7   :  { %s193_s17 = sshll.u32 %s171_s16, 4  ;;  %v28_v0 = vld [vmem:[#allocation2] sm:$0x3]  ;;  %v29_v2 = vld [vmem:[#allocation2 + $0x2] sm:$0x3]  ;;  %s90_s17 = int_to_ptr.vmem [resolvable:$true] %s193_s17 }
   0x8   :  { %v108_v1 = vld [vmem:[%s239_s1] ss:$0 sm:$0xff]  ;;  %v109_v3 = vld [vmem:[%s239_s1 + $0x1] ss:$0 sm:$0xff]  ;;  %v30_v5 = vld [vmem:[#allocation2 + $0x4] sm:$0x3] }
   0x9   :  { %v68_v4 = vadd.f32 %v108_v1, %v28_v0  ;;  %v110_v6 = vld [vmem:[%s239_s1 + $0x2] ss:$0 sm:$0xff]  ;;  %v69_v7 = vadd.f32 %v109_v3, %v29_v2  ;;  %v31_v8 = vld [vmem:[#allocation2 + $0x6] sm:$0x3]  ;;  %v111_v9 = vld [vmem:[%s239_s1 + $0x3] ss:$0 sm:$0xff] }
   0xa   :  { %v70_v10 = vadd.f32 %v110_v6, %v30_v5  ;;  %v32_v11 = vld [vmem:[#allocation2 + $0x8] sm:$0x3]  ;;  %v71_v12 = vadd.f32 %v111_v9, %v31_v8  ;;  %v112_v13 = vld [vmem:[%s239_s1 + $0x4] ss:$0 sm:$0xff]  ;;  %v33_v14 = vld [vmem:[#allocation2 + $0xa] sm:$0x3] }
   0xb   :  { %77 = vst.msk [vmem:[#allocation5] sm:$0x3] %vm76_vm0, %v68_v4  ;;  %v113_v15 = vld [vmem:[%s239_s1 + $0x5] ss:$0 sm:$0xff]  ;;  %v72_v16 = vadd.f32 %v112_v13, %v32_v11  ;;  %v34_v17 = vld [vmem:[#allocation2 + $0xc] sm:$0x3] }
   0xc   :  { %78 = vst.msk [vmem:[#allocation5 + $0x2] sm:$0x3] %vm76_vm0, %v69_v7  ;;  %v73_v18 = vadd.f32 %v113_v15, %v33_v14  ;;  %v114_v19 = vld [vmem:[%s239_s1 + $0x6] ss:$0 sm:$0xff]  ;;  %v35_v20 = vld [vmem:[#allocation2 + $0xe] sm:$0x3] }
   0xd   :  { %79 = vst.msk [vmem:[#allocation5 + $0x4] sm:$0x3] %vm76_vm0, %v70_v10  ;;  %v115_v21 = vld [vmem:[%s239_s1 + $0x7] ss:$0 sm:$0xff]  ;;  %v74_v22 = vadd.f32 %v114_v19, %v34_v17 }
   0xe   :  { %80 = vst.msk [vmem:[#allocation5 + $0x6] sm:$0x3] %vm76_vm0, %v71_v12  ;;  %v75_v23 = vadd.f32 %v115_v21, %v35_v20 }
   0xf   :  { %81 = vst.msk [vmem:[#allocation5 + $0x8] sm:$0x3] %vm76_vm0, %v72_v16 }
  0x10   :  { %82 = vst.msk [vmem:[#allocation5 + $0xa] sm:$0x3] %vm76_vm0, %v73_v18 }
  0x11   :  { %83 = vst.msk [vmem:[#allocation5 + $0xc] sm:$0x3] %vm76_vm0, %v74_v22 }
  0x12   :  { %84 = vst.msk [vmem:[#allocation5 + $0xe] sm:$0x3] %vm76_vm0, %v75_v23 }
  0x13   :  { %97 = dma.vmem_to_hbm [thread:$0]  %s90_s17, 256, %s92_s0, [#allocation4], %s169_s14, %s169_s14, %s170_s15  }
  0x14   :  { %166 = dma.done.wait [#allocation4], 256  }
  0x15   :  { %167 = vsyncadd [#allocation4], 4294967040 }
  0x16   :  { %102 = vsyncpa [#allocation3], 1 }
  0x17   :  { %103 = vsyncpa [#allocation4], 1 }

</bundles_post_ra>
